<compile_context>
chip_gen: v7x
topology: tpu7x:2x2x1
jax: 0.10.0
libtpu: 0.0.40
codegen_flags: <defaults>
</compile_context>

<pallas_src>
import functools

import jax
import jax.numpy as jnp
from jax.experimental import pallas as pl
from jax.experimental.pallas import tpu as pltpu

LANE = 128           # lane width (last dim alignment)
SUBLANE_BF16 = 16    # bf16 native sublane tile (second-to-last dim alignment)


def _round_up(n, m):
    return ((n + m - 1) // m) * m


def actor_kernel(x_ref, w1_ref, b1_ref, w2_ref, b2_ref, w3_ref, b3_ref,
                 out_ref, *, exp_in_bf16=False):
    # x stays narrow f32 in HBM; cast to bf16 on-chip for the MXU.
    x = x_ref[...].astype(jnp.bfloat16)

    # Layer 1: Linear (bf16 MXU inputs, f32 accumulation) + ReLU.
    h1 = jnp.dot(x, w1_ref[...], preferred_element_type=jnp.float32) + b1_ref[...]
    h1 = jnp.maximum(h1, 0.0)

    # Layer 2: Linear + ReLU.
    h2 = jnp.dot(h1.astype(jnp.bfloat16), w2_ref[...],
                 preferred_element_type=jnp.float32) + b2_ref[...]
    h2 = jnp.maximum(h2, 0.0)

    # Layer 3: logits over the padded (128-lane) action dim. Padded W3 columns
    # are zero and b3's padded lanes are pre-poisoned to -1e30, so the padded
    # logits vanish in the softmax with no in-kernel iota/where mask.
    logits = jnp.dot(h2.astype(jnp.bfloat16), w3_ref[...],
                     preferred_element_type=jnp.float32) + b3_ref[...]

    # Numerically-stable softmax.
    m = jnp.max(logits, axis=-1, keepdims=True)
    z = logits - m
    if exp_in_bf16:
        # v6e/v7x only (bf16 EUP path ~2x exp throughput); never enable on v5e.
        e = jnp.exp(z.astype(jnp.bfloat16)).astype(jnp.float32)
    else:
        e = jnp.exp(z)
    denom = jnp.sum(e, axis=-1, keepdims=True)
    # Exact divide: downstream PPO takes log-prob ratios, and the approx EUP
    # reciprocal only normalized to ~1e-3. Kernel is HBM-bound; divide is free.
    out_ref[...] = e / denom


def pad_and_cast_params(params):
    """Pad weights/biases to 128-lane multiples; weights -> bf16, biases f32.

    W1 keeps its real (small) contraction dim; only output dims are padded.
    b3's padded lanes are set to -1e30 so the softmax mask is baked in.
    """
    w1, b1, w2, b2, w3, b3 = params
    state_dim, hidden = w1.shape
    action_dim = w3.shape[1]
    d_h = _round_up(hidden, LANE)
    d_out = _round_up(action_dim, LANE)

    w1p = jnp.pad(w1, ((0, 0), (0, d_h - hidden))).astype(jnp.bfloat16)
    w2p = jnp.pad(w2, ((0, d_h - hidden), (0, d_h - hidden))).astype(jnp.bfloat16)
    w3p = jnp.pad(w3, ((0, d_h - hidden), (0, d_out - action_dim))).astype(jnp.bfloat16)
    b1p = jnp.pad(b1, ((0, 0), (0, d_h - hidden)))
    b2p = jnp.pad(b2, ((0, 0), (0, d_h - hidden)))
    b3p = jnp.pad(b3, ((0, 0), (0, d_out - action_dim)), constant_values=-1e30)
    return (w1p, b1p, w2p, b2p, w3p, b3p)


def actor_forward(x, padded_params, action_dim, *, tile_b=2048, exp_in_bf16=False):
    w1p, b1p, w2p, b2p, w3p, b3p = padded_params
    B, state_dim = x.shape
    d_h = w1p.shape[1]
    d_out = w3p.shape[1]

    # Large batch tiles amortize per-grid-step overhead (~0.35 us); VMEM is a
    # non-issue (tile_b=2048 -> ~2.5 MiB double-buffered + ~100 KiB weights).
    tile_b = min(tile_b, _round_up(B, SUBLANE_BF16))
    tile_b = _round_up(tile_b, SUBLANE_BF16)
    b_pad = _round_up(B, tile_b)
    # v7x megacore: if only one grid step would result but the padded batch
    # allows an even sublane-aligned split, halve the tile so both TensorCores
    # get work on the "parallel" batch axis (harmless on v5e/v6e).
    if b_pad // tile_b == 1 and b_pad % (2 * SUBLANE_BF16) == 0:
        tile_b = b_pad // 2

    # Pad batch rows only; the feature dim stays narrow in HBM.
    xp = jnp.pad(x, ((0, b_pad - B), (0, 0)))

    resident = lambda i: (0, 0)  # constant index_map: weights stay in VMEM

    out = pl.pallas_call(
        functools.partial(actor_kernel, exp_in_bf16=exp_in_bf16),
        out_shape=jax.ShapeDtypeStruct((b_pad, d_out), jnp.float32),
        grid=(b_pad // tile_b,),
        in_specs=[
            pl.BlockSpec((tile_b, state_dim), lambda i: (i, 0)),  # x tile (narrow K)
            pl.BlockSpec((state_dim, d_h), resident),             # W1
            pl.BlockSpec((1, d_h), resident),                     # b1
            pl.BlockSpec((d_h, d_h), resident),                   # W2
            pl.BlockSpec((1, d_h), resident),                     # b2
            pl.BlockSpec((d_h, d_out), resident),                 # W3
            pl.BlockSpec((1, d_out), resident),                   # b3 (mask baked in)
        ],
        out_specs=pl.BlockSpec((tile_b, d_out), lambda i: (i, 0)),
        compiler_params=pltpu.CompilerParams(
            dimension_semantics=("parallel",)),
    )(xp, w1p, b1p, w2p, b2p, w3p, b3p)

    # Slice the real rows / real action columns outside the kernel.
    return out[:B, :action_dim]


def init_params(key, state_dim, hidden_dim, action_dim):
    # Deterministic synthetic init (PyTorch-Linear-like uniform fan-in bound).
    ks = jax.random.split(key, 6)

    def lin(kw, kb, fan_in, fan_out):
        bound = 1.0 / jnp.sqrt(fan_in)
        w = jax.random.uniform(kw, (fan_in, fan_out), jnp.float32, -bound, bound)
        b = jax.random.uniform(kb, (1, fan_out), jnp.float32, -bound, bound)
        return w, b

    w1, b1 = lin(ks[0], ks[1], state_dim, hidden_dim)
    w2, b2 = lin(ks[2], ks[3], hidden_dim, hidden_dim)
    w3, b3 = lin(ks[4], ks[5], hidden_dim, action_dim)
    return (w1, b1, w2, b2, w3, b3)


def actor_reference_f32(x, params):
    # Pure-f32 PyTorch-equivalent forward.
    w1, b1, w2, b2, w3, b3 = params
    h1 = jnp.maximum(x @ w1 + b1, 0.0)
    h2 = jnp.maximum(h1 @ w2 + b2, 0.0)
    return jax.nn.softmax(h2 @ w3 + b3, axis=-1)


def actor_reference_bf16(x, params):
    # Mirrors the kernel's bf16-input / f32-accumulation matmul numerics.
    w1, b1, w2, b2, w3, b3 = params
    bf = jnp.bfloat16
    h1 = jnp.maximum(jnp.dot(x.astype(bf), w1.astype(bf),
                             preferred_element_type=jnp.float32) + b1, 0.0)
    h2 = jnp.maximum(jnp.dot(h1.astype(bf), w2.astype(bf),
                             preferred_element_type=jnp.float32) + b2, 0.0)
    logits = jnp.dot(h2.astype(bf), w3.astype(bf),
                     preferred_element_type=jnp.float32) + b3
    return jax.nn.softmax(logits, axis=-1)


if __name__ == "__main__":
    # CartPole-v1: state_dim=4, action_dim=2. Small hidden/batch for the demo.
    state_dim, action_dim, hidden_dim = 4, 2, 32
    batch = 8

    key = jax.random.PRNGKey(0)
    k_x, k_p = jax.random.split(key)

    x = jax.random.normal(k_x, (batch, state_dim), jnp.float32)
    params = init_params(k_p, state_dim, hidden_dim, action_dim)
    padded_params = pad_and_cast_params(params)

    prob = actor_forward(x, padded_params, action_dim)
    prob = jax.block_until_ready(prob)

    assert prob.shape == (batch, action_dim)

    # Tight check vs a reference that mirrors the kernel's bf16 MXU numerics.
    ref_bf16 = actor_reference_bf16(x, params)
    assert jnp.allclose(prob, ref_bf16, atol=1e-3, rtol=1e-3), "mismatch vs bf16 reference"

    # Loose sanity check vs the pure-f32 PyTorch-equivalent forward.
    ref_f32 = actor_reference_f32(x, params)
    assert jnp.allclose(prob, ref_f32, atol=5e-2), "mismatch vs f32 reference"

    # Exact-divide softmax: probabilities sum to 1 to f32 precision.
    assert jnp.allclose(jnp.sum(prob, axis=-1), 1.0, atol=1e-3), "probs must sum to 1"

    print("KERNEL_OK")
</pallas_src>

<mosaic_0001>
module attributes {stable_mosaic.version = 11 : i64} {
  func.func @actor_kernel(%arg0: i32, %arg1: memref<16x4xf32, #tpu.memory_space<vmem>>, %arg2: memref<4x128xbf16, #tpu.memory_space<vmem>>, %arg3: memref<1x128xf32, #tpu.memory_space<vmem>>, %arg4: memref<128x128xbf16, #tpu.memory_space<vmem>>, %arg5: memref<1x128xf32, #tpu.memory_space<vmem>>, %arg6: memref<128x128xbf16, #tpu.memory_space<vmem>>, %arg7: memref<1x128xf32, #tpu.memory_space<vmem>>, %arg8: memref<16x128xf32, #tpu.memory_space<vmem>>) attributes {dimension_semantics = [#tpu.dimension_semantics<parallel>], iteration_bounds = array<i64: 1>, scalar_prefetch = 0 : i64, scratch_operands = 0 : i64, tpu.core_type = #tpu.core_type<tc>, window_params = [{transform_indices = @transform_0, window_bounds = array<i64: 16, 4>}, {pipeline_mode = #tpu.pipeline_mode<synchronous>, transform_indices = @transform_1, window_bounds = array<i64: 4, 128>}, {pipeline_mode = #tpu.pipeline_mode<synchronous>, transform_indices = @transform_2, window_bounds = array<i64: 1, 128>}, {pipeline_mode = #tpu.pipeline_mode<synchronous>, transform_indices = @transform_3, window_bounds = array<i64: 128, 128>}, {pipeline_mode = #tpu.pipeline_mode<synchronous>, transform_indices = @transform_4, window_bounds = array<i64: 1, 128>}, {pipeline_mode = #tpu.pipeline_mode<synchronous>, transform_indices = @transform_5, window_bounds = array<i64: 128, 128>}, {pipeline_mode = #tpu.pipeline_mode<synchronous>, transform_indices = @transform_6, window_bounds = array<i64: 1, 128>}, {transform_indices = @transform_7, window_bounds = array<i64: 16, 128>}]} {
    %c0 = arith.constant 0 : index
    %c0_0 = arith.constant 0 : index
    %0 = vector.load %arg1[%c0, %c0_0] : memref<16x4xf32, #tpu.memory_space<vmem>>, vector<16x4xf32>
    %1 = arith.truncf %0 : vector<16x4xf32> to vector<16x4xbf16>
    %c0_1 = arith.constant 0 : index
    %c0_2 = arith.constant 0 : index
    %2 = vector.load %arg2[%c0_1, %c0_2] : memref<4x128xbf16, #tpu.memory_space<vmem>>, vector<4x128xbf16>
    %cst = arith.constant dense<0.000000e+00> : vector<16x128xf32>
    %3 = tpu.matmul %1, %2, %cst {dimension_numbers = #tpu.dot_dimension_numbers<[1], [0], [0], [1], [0, 0, 1, 1], [], []>} : vector<16x4xbf16>, vector<4x128xbf16>, vector<16x128xf32> -> vector<16x128xf32>
    %c0_3 = arith.constant 0 : index
    %c0_4 = arith.constant 0 : index
    %4 = vector.load %arg3[%c0_3, %c0_4] : memref<1x128xf32, #tpu.memory_space<vmem>>, vector<1x128xf32>
    %5 = vector.broadcast %4 : vector<1x128xf32> to vector<16x128xf32>
    %6 = arith.addf %3, %5 : vector<16x128xf32>
    %cst_5 = arith.constant 0.000000e+00 : f32
    %7 = vector.broadcast %cst_5 : f32 to vector<16x128xf32>
    %8 = arith.maximumf %6, %7 : vector<16x128xf32>
    %9 = arith.truncf %8 : vector<16x128xf32> to vector<16x128xbf16>
    %c0_6 = arith.constant 0 : index
    %c0_7 = arith.constant 0 : index
    %10 = vector.load %arg4[%c0_6, %c0_7] : memref<128x128xbf16, #tpu.memory_space<vmem>>, vector<128x128xbf16>
    %cst_8 = arith.constant dense<0.000000e+00> : vector<16x128xf32>
    %11 = tpu.matmul %9, %10, %cst_8 {dimension_numbers = #tpu.dot_dimension_numbers<[1], [0], [0], [1], [0, 0, 1, 1], [], []>} : vector<16x128xbf16>, vector<128x128xbf16>, vector<16x128xf32> -> vector<16x128xf32>
    %c0_9 = arith.constant 0 : index
    %c0_10 = arith.constant 0 : index
    %12 = vector.load %arg5[%c0_9, %c0_10] : memref<1x128xf32, #tpu.memory_space<vmem>>, vector<1x128xf32>
    %13 = vector.broadcast %12 : vector<1x128xf32> to vector<16x128xf32>
    %14 = arith.addf %11, %13 : vector<16x128xf32>
    %cst_11 = arith.constant 0.000000e+00 : f32
    %15 = vector.broadcast %cst_11 : f32 to vector<16x128xf32>
    %16 = arith.maximumf %14, %15 : vector<16x128xf32>
    %17 = arith.truncf %16 : vector<16x128xf32> to vector<16x128xbf16>
    %c0_12 = arith.constant 0 : index
    %c0_13 = arith.constant 0 : index
    %18 = vector.load %arg6[%c0_12, %c0_13] : memref<128x128xbf16, #tpu.memory_space<vmem>>, vector<128x128xbf16>
    %cst_14 = arith.constant dense<0.000000e+00> : vector<16x128xf32>
    %19 = tpu.matmul %17, %18, %cst_14 {dimension_numbers = #tpu.dot_dimension_numbers<[1], [0], [0], [1], [0, 0, 1, 1], [], []>} : vector<16x128xbf16>, vector<128x128xbf16>, vector<16x128xf32> -> vector<16x128xf32>
    %c0_15 = arith.constant 0 : index
    %c0_16 = arith.constant 0 : index
    %20 = vector.load %arg7[%c0_15, %c0_16] : memref<1x128xf32, #tpu.memory_space<vmem>>, vector<1x128xf32>
    %21 = vector.broadcast %20 : vector<1x128xf32> to vector<16x128xf32>
    %22 = arith.addf %19, %21 : vector<16x128xf32>
    %cst_17 = arith.constant dense<0xFF800000> : vector<16xf32>
    %23 = vector.multi_reduction <maximumf>, %22, %cst_17 [1] : vector<16x128xf32> to vector<16xf32>
    %24 = vector.shape_cast %23 : vector<16xf32> to vector<16x1xf32>
    %25 = vector.broadcast %24 : vector<16x1xf32> to vector<16x128xf32>
    %26 = arith.subf %22, %25 : vector<16x128xf32>
    %27 = math.exp %26 : vector<16x128xf32>
    %cst_18 = arith.constant dense<0.000000e+00> : vector<16xf32>
    %28 = vector.multi_reduction <add>, %27, %cst_18 [1] : vector<16x128xf32> to vector<16xf32>
    %29 = vector.shape_cast %28 : vector<16xf32> to vector<16x1xf32>
    %30 = vector.broadcast %29 : vector<16x1xf32> to vector<16x128xf32>
    %31 = arith.divf %27, %30 : vector<16x128xf32>
    %c0_19 = arith.constant 0 : index
    %c0_20 = arith.constant 0 : index
    %32 = vector.load %arg8[%c0_19, %c0_20] : memref<16x128xf32, #tpu.memory_space<vmem>>, vector<16x128xf32>
    tpu.vector_store %arg8[%c0_19, %c0_20], %31 {strides = array<i32>} : memref<16x128xf32, #tpu.memory_space<vmem>>, vector<16x128xf32>,
    return
  }
  func.func @transform_0(%arg0: i32) -> (i32, i32) {
    %c0_i32 = arith.constant 0 : i32
    %c0_i32_0 = arith.constant 0 : i32
    return %arg0, %c0_i32 : i32, i32
  }
  func.func @transform_1(%arg0: i32) -> (i32, i32) {
    %c0_i32 = arith.constant 0 : i32
    %c0_i32_0 = arith.constant 0 : i32
    %c0_i32_1 = arith.constant 0 : i32
    return %c0_i32, %c0_i32_0 : i32, i32
  }
  func.func @transform_2(%arg0: i32) -> (i32, i32) {
    %c0_i32 = arith.constant 0 : i32
    %c0_i32_0 = arith.constant 0 : i32
    %c0_i32_1 = arith.constant 0 : i32
    return %c0_i32, %c0_i32_0 : i32, i32
  }
  func.func @transform_3(%arg0: i32) -> (i32, i32) {
    %c0_i32 = arith.constant 0 : i32
    %c0_i32_0 = arith.constant 0 : i32
    %c0_i32_1 = arith.constant 0 : i32
    return %c0_i32, %c0_i32_0 : i32, i32
  }
  func.func @transform_4(%arg0: i32) -> (i32, i32) {
    %c0_i32 = arith.constant 0 : i32
    %c0_i32_0 = arith.constant 0 : i32
    %c0_i32_1 = arith.constant 0 : i32
    return %c0_i32, %c0_i32_0 : i32, i32
  }
  func.func @transform_5(%arg0: i32) -> (i32, i32) {
    %c0_i32 = arith.constant 0 : i32
    %c0_i32_0 = arith.constant 0 : i32
    %c0_i32_1 = arith.constant 0 : i32
    return %c0_i32, %c0_i32_0 : i32, i32
  }
  func.func @transform_6(%arg0: i32) -> (i32, i32) {
    %c0_i32 = arith.constant 0 : i32
    %c0_i32_0 = arith.constant 0 : i32
    %c0_i32_1 = arith.constant 0 : i32
    return %c0_i32, %c0_i32_0 : i32, i32
  }
  func.func @transform_7(%arg0: i32) -> (i32, i32) {
    %c0_i32 = arith.constant 0 : i32
    %c0_i32_0 = arith.constant 0 : i32
    return %arg0, %c0_i32 : i32, i32
  }
}

</mosaic_0001>

<bundles_post_ra>
// kernel: tpu_custom_call.1
= control target key start
LH: loop header
LB: loop body
LE: loop exit
PB: predicated region body
PF: predicated region fallthrough
CT: control target
= control target key end

     0   :  { %12 = vsyncpa [#allocation3], 0  ;;  %s701_s0 = inlined_call_operand.vmem [shape: f32[16,4], index: 0, kind: input, shape index: {}]   ;;  %s702_s1 = inlined_call_operand.vmem [shape: bf16[4,128], index: 1, kind: input, shape index: {}]   ;;  %s703_s2 = inlined_call_operand.vmem [shape: f32[1,128], index: 2, kind: input, shape index: {}]   ;;  %s704_s3 = inlined_call_operand.hbm [shape: bf16[128,128], index: 3, kind: input, shape index: {}]   ;;  %s705_s4 = inlined_call_operand.vmem [shape: f32[1,128], index: 4, kind: input, shape index: {}]   ;;  %s706_s5 = inlined_call_operand.hbm [shape: bf16[128,128], index: 5, kind: input, shape index: {}]   ;;  %s707_s6 = inlined_call_operand.vmem [shape: f32[1,128], index: 6, kind: input, shape index: {}]   ;;  %s708_s7 = inlined_call_operand.hbm [shape: f32[16,128], index: 7, kind: output, shape index: {}]  }
   0x1   :  { %13 = vsyncpa [#allocation6], 0 }
   0x2   :  { %14 = vsyncpa [#allocation4], 0  ;;  %s575_s24 = smov [#allocation2]   ;;  %s503_s28 = scalar_lea.hbm %s704_s3, 1024 }
   0x3   :  { %s26_s25 = sshll.u32 %s575_s24, 4  ;;  %p504_p0 = scmp.ne.s32.totalorder %s704_s3, %s503_s28  ;;  %s27_s25 = int_to_ptr.vmem [resolvable:$true] %s26_s25 }
   0x4   :  { %p507_p1 = scmp.lt.u32.totalorder %s503_s28, %s704_s3 }
   0x6   :  { %p509_p2 = pnand %p507_p1, %p504_p0 }
   0x8   :  { %512 = shalt.err (!%p509_p2)
}
   0x9   :  { %s513_s10 = scalar_lea.vmem %s27_s25, 1024  ;;  %p518_p4 = scmp.lt.s32.totalorder %s27_s25, %s27_s25 }
   0xa   :  { %p514_p3 = scmp.ne.s32.totalorder %s27_s25, %s513_s10  ;;  %p519_p5 = scmp.lt.s32.totalorder %s513_s10, %s513_s10 }
   0xc   :  { %p520_p6 = por %p519_p5, %p518_p4 }
   0xe   :  { %p521_p7 = pnand %p520_p6, %p514_p3 }
  0x10   :  { %524 = shalt.err (!%p521_p7)
}
  0x11   :  { %s576_s11 = smov 64   ;;  %s577_s12 = smov 4  }
  0x12   :  { %32 = dma.hbm_to_vmem [thread:$0]  %s704_s3, 1024, %s27_s25, [#allocation3], %s576_s11, %s576_s11, %s577_s12  }
  0x13   :  { %s578_s15 = smov [#allocation5]   ;;  %s525_s19 = scalar_lea.hbm %s706_s5, 1024 }
  0x14   :  { %s40_s16 = sshll.u32 %s578_s15, 4  ;;  %p526_p8 = scmp.ne.s32.totalorder %s706_s5, %s525_s19  ;;  %s41_s16 = int_to_ptr.vmem [resolvable:$true] %s40_s16 }
  0x15   :  { %p529_p9 = scmp.lt.u32.totalorder %s525_s19, %s706_s5 }
  0x17   :  { %p531_p10 = pnand %p529_p9, %p526_p8 }
  0x19   :  { %534 = shalt.err (!%p531_p10)
}
  0x1a   :  { %s535_s24 = scalar_lea.vmem %s41_s16, 1024  ;;  %p540_p12 = scmp.lt.s32.totalorder %s41_s16, %s41_s16 }
  0x1b   :  { %p536_p11 = scmp.ne.s32.totalorder %s41_s16, %s535_s24  ;;  %p541_p13 = scmp.lt.s32.totalorder %s535_s24, %s535_s24 }
  0x1d   :  { %p542_p0 = por %p541_p13, %p540_p12 }
  0x1f   :  { %p543_p1 = pnand %p542_p0, %p536_p11 }
  0x21   :  { %546 = shalt.err (!%p543_p1)
}
  0x22   :  { %46 = dma.hbm_to_vmem [thread:$0]  %s706_s5, 1024, %s41_s16, [#allocation6], %s576_s11, %s576_s11, %s577_s12  }
  0x23   :  { %569 = dma.done.wait [#allocation3], 1024  }
  0x24   :  { %570 = vsyncadd [#allocation3], 4294966272 }
  0x25   :  { %571 = dma.done.wait [#allocation6], 1024  }
  0x26   :  { %572 = vsyncadd [#allocation6], 4294966272  ;;  %v579_v0 = vmov 0.0   ;;  %vm580_vm0 = vmmov 0   ;;  %vm71_vm1 = vcmask 1041408   ;;  %v56_v2 = vld [vmem:[%s701_s0] sm:$0xff] }
  0x27   :  { %424 = vmatprep.subr.bf16.mxu0 %v579_v0  ;;  %426 = vmatprep.mubr.msk.bf16.mxu0 %vm580_vm0, %v579_v0  ;;  %v59_v1 = vld [vmem:[%s702_s1] sm:$0x3]  ;;  %v57_v3 = vld [vmem:[%s701_s0 + $0x8] sm:$0xff]  ;;  %vm67_vm2 = vcmask 31744   ;;  %v481_v8 = vld [vmem:[#allocation2 + $0x10] sm:$0xff]  }
  0x28   :  { %430 = vmatprep.subr.bf16.mxu1 %v579_v0  ;;  %446 = vmatprep.mubr.msk.bf16.mxu1 %vm580_vm0, %v579_v0  ;;  %v73_v4 = vsel %vm71_vm1, %v59_v1, 0  ;;  %v58_v5 = vpack.c.bf16 %v57_v3, %v56_v2  ;;  %v479_v6 = vld [vmem:[#allocation2] sm:$0xff]   ;;  %v480_v7 = vld [vmem:[#allocation2 + $0x8] sm:$0xff]   ;;  %v482_v9 = vld [vmem:[#allocation2 + $0x18] sm:$0xff]  }
  0x29   :  { %425 = vmatpush3.bf16.msra.mxu0 %v73_v4  ;;  %431 = vmatpush3.bf16.msra.mxu1 %v479_v6  ;;  %v483_v10 = vld [vmem:[#allocation2 + $0x20] sm:$0xff]   ;;  %v484_v11 = vld [vmem:[#allocation2 + $0x28] sm:$0xff]   ;;  %v485_v12 = vld [vmem:[#allocation2 + $0x30] sm:$0xff]  }
  0x2a   :  { %450 = vmatprep.subr.bf16.mxu0 %v579_v0  ;;  %432 = vmatprep.subr.bf16.mxu1 %v579_v0  ;;  %v486_v13 = vld [vmem:[#allocation2 + $0x38] sm:$0xff]   ;;  %v487_v14 = vld [vmem:[#allocation5] sm:$0xff]   ;;  %v488_v15 = vld [vmem:[#allocation5 + $0x8] sm:$0xff]  }
  0x2b   :  { %v489_v16 = vld [vmem:[#allocation5 + $0x10] sm:$0xff]   ;;  %v490_v17 = vld [vmem:[#allocation5 + $0x18] sm:$0xff]   ;;  %v491_v18 = vld [vmem:[#allocation5 + $0x20] sm:$0xff]  }
  0x2c   :  { %427 = vmatmul.mubr.msk.bf16.vlgmr.msra.gmra.mrb[0].mxu0 %vm67_vm2, %v58_v5  ;;  %v492_v19 = vld [vmem:[#allocation5 + $0x28] sm:$0xff]   ;;  %v384_v20 = vld [vmem:[%s703_s2] ss:$0 sm:$0xff]  ;;  %v493_v30 = vld [vmem:[#allocation5 + $0x30] sm:$0xff]  }
  0x2d   :  { %466 = vmatprep.mubr.msk.bf16.mxu0 %vm580_vm0, %v579_v0  ;;  %433 = vmatpush3.bf16.msra.mxu1 %v480_v7  ;;  %v494_v31 = vld [vmem:[#allocation5 + $0x38] sm:$0xff]   ;;  %v386_v32 = vld [vmem:[%s705_s4] ss:$0 sm:$0xff]  ;;  %s581_s4 = smov [#allocation7]  }
  0x2e   :  { %434 = vmatprep.subr.bf16.mxu1 %v579_v0  ;;  %451 = vmatpush3.bf16.msra.mxu0 %v487_v14  ;;  %v395_v42 = vld [vmem:[%s707_s6] ss:$0 sm:$0xff]  ;;  %s371_s6 = sshll.u32 %s581_s4, 4  ;;  %s372_s6 = int_to_ptr.vmem [resolvable:$true] %s371_s6 }
  0x2f   :  { %452 = vmatprep.subr.bf16.mxu0 %v579_v0  ;;  %s547_s11 = scalar_lea.vmem %s372_s6, 256  ;;  %p552_p3 = scmp.lt.s32.totalorder %s372_s6, %s372_s6 }
  0x30   :  { %p548_p2 = scmp.ne.s32.totalorder %s372_s6, %s547_s11  ;;  %p553_p4 = scmp.lt.s32.totalorder %s547_s11, %s547_s11 }
  0x31   :  { %435 = vmatpush3.bf16.msra.mxu1 %v481_v8 }
  0x32   :  { %436 = vmatprep.subr.bf16.mxu1 %v579_v0  ;;  %453 = vmatpush3.bf16.msra.mxu0 %v488_v15  ;;  %p554_p5 = por %p553_p4, %p552_p3 }
  0x33   :  { %454 = vmatprep.subr.bf16.mxu0 %v579_v0 }
  0x34   :  { %p555_p6 = pnand %p554_p5, %p548_p2 }
  0x35   :  { %437 = vmatpush3.bf16.msra.mxu1 %v482_v9 }
  0x36   :  { %438 = vmatprep.subr.bf16.mxu1 %v579_v0  ;;  %455 = vmatpush3.bf16.msra.mxu0 %v489_v16 }
  0x37   :  { %456 = vmatprep.subr.bf16.mxu0 %v579_v0 }
  0x39   :  { %439 = vmatpush3.bf16.msra.mxu1 %v483_v10 }
  0x3a   :  { %440 = vmatprep.subr.bf16.mxu1 %v579_v0  ;;  %457 = vmatpush3.bf16.msra.mxu0 %v490_v17 }
  0x3b   :  { %458 = vmatprep.subr.bf16.mxu0 %v579_v0 }
  0x3d   :  { %441 = vmatpush3.bf16.msra.mxu1 %v484_v11 }
  0x3e   :  { %442 = vmatprep.subr.bf16.mxu1 %v579_v0  ;;  %459 = vmatpush3.bf16.msra.mxu0 %v491_v18 }
  0x3f   :  { %460 = vmatprep.subr.bf16.mxu0 %v579_v0 }
  0x41   :  { %443 = vmatpush3.bf16.msra.mxu1 %v485_v12 }
  0x42   :  { %444 = vmatprep.subr.bf16.mxu1 %v579_v0  ;;  %461 = vmatpush3.bf16.msra.mxu0 %v492_v19 }
  0x43   :  { %462 = vmatprep.subr.bf16.mxu0 %v579_v0 }
  0x45   :  { %445 = vmatpush3.bf16.msra.mxu1 %v486_v13 }
  0x46   :  { %463 = vmatpush3.bf16.msra.mxu0 %v493_v30 }
  0x47   :  { %464 = vmatprep.subr.bf16.mxu0 %v579_v0 }
  0x4a   :  { %465 = vmatpush3.bf16.msra.mxu0 %v494_v31 }
  0xff   :  { %v109_v21 = vpop.f32.mrb[0].mxu0 }
 0x100   :  { %v110_v22 = vadd.f32 %v384_v20, %v109_v21  ;;  %v428_v23 = vpop.f32.mrb[1].mxu0 }
 0x101   :  { %v112_v24 = vpop.f32.mrb[2].mxu0 }
 0x102   :  { %v113_v25 = vadd.f32 %v384_v20, %v112_v24  ;;  %v429_v26 = vpop.f32.mrb[3].mxu0  ;;  %v116_v27 = vmax.f32 %v110_v22, 0.0 }
 0x104   :  { %v117_v28 = vmax.f32 %v113_v25, 0.0 }
 0x106   :  { %v118_v29 = vpack.c.bf16 %v117_v28, %v116_v27 }
 0x108   :  { %447 = vmatmul.mubr.bf16.vlgmr.msra.gmra.mrb[0].mxu1 %v118_v29 }
 0x1db   :  { %v224_v33 = vpop.f32.mrb[0].mxu1 }
 0x1dc   :  { %v225_v34 = vadd.f32 %v386_v32, %v224_v33  ;;  %v448_v35 = vpop.f32.mrb[1].mxu1 }
 0x1dd   :  { %v227_v36 = vpop.f32.mrb[2].mxu1 }
 0x1de   :  { %v228_v37 = vadd.f32 %v386_v32, %v227_v36  ;;  %v449_v38 = vpop.f32.mrb[3].mxu1  ;;  %v231_v39 = vmax.f32 %v225_v34, 0.0 }
 0x1e0   :  { %v232_v40 = vmax.f32 %v228_v37, 0.0 }
 0x1e2   :  { %v233_v41 = vpack.c.bf16 %v232_v40, %v231_v39 }
 0x1e4   :  { %467 = vmatmul.mubr.bf16.vlgmr.msra.gmra.mrb[4].mxu0 %v233_v41 }
 0x2b7   :  { %v339_v43 = vpop.f32.mrb[4].mxu0 }
 0x2b8   :  { %v340_v44 = vadd.f32 %v395_v42, %v339_v43  ;;  %v468_v45 = vpop.f32.mrb[5].mxu0 }
 0x2b9   :  { %v342_v46 = vpop.f32.mrb[6].mxu0 }
 0x2ba   :  { %346 = vmax.xlane.f32.xlu0 %v340_v44  ;;  %v469_v47 = vpop.f32.mrb[7].mxu0  ;;  %v343_v48 = vadd.f32 %v395_v42, %v342_v46 }
 0x2be   :  { %348 = vmax.xlane.f32.xlu0 %v343_v48 }
 0x347   :  { %v347_v49 = vpop.xlane.xlu0 %346 }
 0x348   :  { %v350_v50 = vsub.f32 %v340_v44, %v347_v49 }
 0x34a   :  { %v352_v51 = vmul.f32 1.442695, %v350_v50 }
 0x34b   :  { %v349_v52 = vpop.xlane.xlu0 %348 }
 0x34c   :  { %495 = vpow2.f32 %v352_v51  ;;  %v351_v53 = vsub.f32 %v343_v48, %v349_v52 }
 0x34e   :  { %v354_v54 = vmul.f32 1.442695, %v351_v53 }
 0x350   :  { %497 = vpow2.f32 %v354_v54 }
 0x356   :  { %v496_v55 = vpop.eup %495 }
 0x357   :  { %356 = vadd.xlane.f32.xlu1 %v496_v55 }
 0x35a   :  { %v498_v56 = vpop.eup %497 }
 0x35b   :  { %358 = vadd.xlane.f32.xlu1 %v498_v56 }
 0x3e4   :  { %v357_v57 = vpop.xlane.xlu1 %356 }
 0x3e5   :  { %499 = vrcp.f32 %v357_v57 }
 0x3e8   :  { %v359_v58 = vpop.xlane.xlu1 %358 }
 0x3e9   :  { %501 = vrcp.f32 %v359_v58 }
 0x3ef   :  { %v500_v59 = vpop.eup %499 }
 0x3f0   :  { %v361_v60 = vmul.f32 %v500_v59, %v496_v55 }
 0x3f2   :  { %364 = vst [vmem:[#allocation7] sm:$0xff] %v361_v60 }
 0x3f3   :  { %v502_v61 = vpop.eup %501 }
 0x3f4   :  { %v363_v62 = vmul.f32 %v502_v61, %v498_v56 }
 0x3f6   :  { %365 = vst [vmem:[#allocation7 + $0x8] sm:$0xff] %v363_v62 }
 0x3f7   :  { %558 = shalt.err (!%p555_p6)
}
 0x3f8   :  { %s559_s14 = scalar_lea.hbm %s708_s7, 256 }
 0x3f9   :  { %p560_p7 = scmp.ne.s32.totalorder %s708_s7, %s559_s14  ;;  %p563_p8 = scmp.lt.u32.totalorder %s559_s14, %s708_s7 }
 0x3fb   :  { %p565_p9 = pnand %p563_p8, %p560_p7 }
 0x3fd   :  { %568 = shalt.err (!%p565_p9)
}
 0x3fe   :  { %s582_s19 = smov 128   ;;  %s583_s20 = smov 8  }
 0x3ff   :  { %377 = dma.vmem_to_hbm [thread:$0]  %s372_s6, 256, %s708_s7, [#allocation4], %s582_s19, %s582_s19, %s583_s20  }
 0x400   :  { %573 = dma.done.wait [#allocation4], 256  }
 0x401   :  { %574 = vsyncadd [#allocation4], 4294967040 }
 0x402   :  { %381 = vsyncpa [#allocation3], 1 }
 0x403   :  { %382 = vsyncpa [#allocation6], 1 }
 0x404   :  { %383 = vsyncpa [#allocation4], 1 }

</bundles_post_ra>
